<compile_context>
chip_gen: v7x
topology: tpu7x:2x2x1
jax: 0.10.0
libtpu: 0.0.40
codegen_flags: <defaults>
</compile_context>

<pallas_src>
import math

import numpy as np
import jax
import jax.numpy as jnp
from jax import lax
from jax.experimental import pallas as pl
from jax.experimental.pallas import tpu as pltpu

_BN_EPS = 1e-5


def _round_up(x, m):
    return ((x + m - 1) // m) * m


def _make_kernel(H, W, C, dilation, halo):
    HW = H * W
    taps = [(kh - 1, kw - 1) for kh in range(3) for kw in range(3)]

    def kernel(x_ref, cidx_ref, bns_ref, bnb_ref, w1_ref, b1_ref, w2_ref, b2_ref,
               out_ref, pbuf_ref, col_ref):
        # Zero ONLY the halo of the flattened padded buffer (the interior is
        # fully overwritten every step).  Done each step because with a
        # "parallel" batch grid a core may never execute program_id == 0.
        zhalo = jnp.zeros((C, halo), jnp.float32)
        pbuf_ref[:, pl.ds(0, halo)] = zhalo
        pbuf_ref[:, pl.ds(halo + HW, halo)] = zhalo

        x = x_ref[0]                # (C, HW) f32, lane-dense spatial
        col_idx = cidx_ref[...]     # (1, HW) int32: column (x coordinate) per pixel

        # --- bn1 (eval-mode running stats folded into scale/shift) + relu ----
        act = jnp.maximum(x * bns_ref[...] + bnb_ref[...], 0.0)

        def im2col(a, d):
            """Fill col_ref (9C, HW) with the 9 shifted zero-padded taps of a."""
            pbuf_ref[:, pl.ds(halo, HW)] = a            # aligned interior store
            for ti, (dh, dw) in enumerate(taps):
                delta = d * (dh * W + dw)
                win = pbuf_ref[:, pl.ds(halo + delta, HW)]        # (C, HW)
                # Row over/underflow lands in the zero halo; only the column
                # wrap-around of the flattened layout needs masking.
                if dw < 0:
                    win = jnp.where(col_idx >= d, win, 0.0)
                elif dw > 0:
                    win = jnp.where(col_idx < W - d, win, 0.0)
                col_ref[pl.ds(ti * C, C), :] = win.astype(col_ref.dtype)

        # --- conv1: 3x3, stride 1, pad 1 -> one (C,9C)x(9C,HW) MXU matmul ----
        im2col(act, 1)
        h = jnp.dot(w1_ref[...], col_ref[...],
                    preferred_element_type=jnp.float32)           # (C, HW) f32
        # TODO(synk): nn.Dropout(0.3) is eval-mode identity here; train-mode
        # dropout masking / train-mode batch-stat BN are not reproduced.
        h = jnp.maximum(h + b1_ref[...], 0.0)

        # --- conv2: 3x3, stride 1, pad = dilation, dilation = dilation --------
        im2col(h, dilation)
        h2 = jnp.dot(w2_ref[...], col_ref[...],
                     preferred_element_type=jnp.float32)          # (C, HW) f32

        # --- bias + residual in f32, single whole-image lane-dense store ------
        out_ref[0] = (h2 + b2_ref[...] + x).astype(out_ref.dtype)

    return kernel


def bottleneck_forward(x_nchw, params, *, padding=1, dilation=1,
                       compute_dtype=jnp.float32):
    """Pallas BottleNeck forward (eval-mode). x: (N, C, H, W) f32 -> (N, C, H, W).

    compute_dtype: dtype of the MXU matmul operands (weights + im2col matrix).
    Use jnp.bfloat16 on v6e/v7x for ~2x MXU throughput; accumulation, BN/ReLU
    and the residual add stay in float32.
    """
    gamma, beta, run_mean, run_var, w1_oihw, b1, w2_oihw, b2 = params
    N, C, H, W = x_nchw.shape
    assert w1_oihw.shape[0] == C and w2_oihw.shape[0] == C, \
        "residual add requires in_channels == out_channels"
    assert padding == dilation and dilation >= 1, \
        "output spatial size must match input spatial size for the residual add"
    HW = H * W
    halo = _round_up(dilation * (W + 1), 128)   # flattened zero halo (aligned)

    # Lane-dense layout: flatten spatial to the last (lane) dimension (free
    # reshape from NCHW — no transpose needed).
    x = x_nchw.reshape(N, C, HW).astype(jnp.float32)

    # Fold eval-mode BatchNorm running stats + affine into per-channel scale/shift.
    inv_std = 1.0 / jnp.sqrt(run_var.astype(jnp.float32) + _BN_EPS)
    bn_scale = (gamma * inv_std).astype(jnp.float32).reshape(C, 1)
    bn_shift = (beta - run_mean * gamma * inv_std).astype(jnp.float32).reshape(C, 1)

    # Matmul-friendly weights: (Cout, 9*Cin), tap-major then input-channel,
    # matching the im2col row order built inside the kernel.
    def to_mat(w_oihw):
        return jnp.transpose(w_oihw, (0, 2, 3, 1)).reshape(C, 9 * C).astype(compute_dtype)

    w1m = to_mat(w1_oihw)
    w2m = to_mat(w2_oihw)
    b1c = b1.reshape(C, 1).astype(jnp.float32)
    b2c = b2.reshape(C, 1).astype(jnp.float32)

    # Precomputed pixel-column index (for masking column wrap-around).
    col_idx = (jnp.arange(HW, dtype=jnp.int32) % W).reshape(1, HW)

    kernel = _make_kernel(H, W, C, dilation, halo)

    def inv(shape):  # grid-invariant block (whole array, same block every step)
        return pl.BlockSpec(shape, lambda n: (0,) * len(shape))

    out = pl.pallas_call(
        kernel,
        out_shape=jax.ShapeDtypeStruct((N, C, HW), jnp.float32),
        grid_spec=pltpu.PrefetchScalarGridSpec(
            num_scalar_prefetch=0,
            grid=(N,),  # one image per grid step; "parallel" -> megacore on v7x
            in_specs=[
                pl.BlockSpec((1, C, HW), lambda n: (n, 0, 0)),   # x (C, HW) lane-dense
                inv((1, HW)),                                    # pixel column index
                inv((C, 1)),                                     # bn scale
                inv((C, 1)),                                     # bn shift
                inv((C, 9 * C)),                                 # conv1 weight (matmul layout)
                inv((C, 1)),                                     # conv1 bias
                inv((C, 9 * C)),                                 # conv2 weight (matmul layout)
                inv((C, 1)),                                     # conv2 bias
            ],
            out_specs=pl.BlockSpec((1, C, HW), lambda n: (n, 0, 0)),
            scratch_shapes=[
                pltpu.VMEM((C, 2 * halo + HW), jnp.float32),     # zero-halo padded activations
                pltpu.VMEM((9 * C, HW), compute_dtype),          # im2col matrix
            ],
        ),
        compiler_params=pltpu.CompilerParams(dimension_semantics=("parallel",)),
    )(x, col_idx, bn_scale, bn_shift, w1m, b1c, w2m, b2c)

    return out.reshape(N, C, H, W)


def bottleneck_reference(x_nchw, params, *, padding=1, dilation=1):
    """Pure-JAX reference (NCHW), mirrors the PyTorch eval-mode forward."""
    gamma, beta, run_mean, run_var, w1, b1, w2, b2 = params
    inv_std = 1.0 / jnp.sqrt(run_var + _BN_EPS)
    t = (x_nchw - run_mean[None, :, None, None]) * (gamma * inv_std)[None, :, None, None] \
        + beta[None, :, None, None]
    t = jnp.maximum(t, 0.0)
    out = lax.conv_general_dilated(
        t, w1, window_strides=(1, 1), padding=((1, 1), (1, 1)),
        dimension_numbers=("NCHW", "OIHW", "NCHW"),
        precision=lax.Precision.HIGHEST)
    out = jnp.maximum(out + b1[None, :, None, None], 0.0)
    out = lax.conv_general_dilated(
        out, w2, window_strides=(1, 1),
        padding=((padding, padding), (padding, padding)),
        rhs_dilation=(dilation, dilation),
        dimension_numbers=("NCHW", "OIHW", "NCHW"),
        precision=lax.Precision.HIGHEST)
    out = out + b2[None, :, None, None]
    return out + x_nchw


if __name__ == "__main__":
    N, C, H, W = 2, 4, 16, 16   # in_channels == out_channels (required by residual add)
    key = jax.random.PRNGKey(0)
    kx, k1, k2, k3, k4, k5, k6, k7, k8 = jax.random.split(key, 9)

    x = jax.random.normal(kx, (N, C, H, W), jnp.float32)

    # xavier_uniform_ with gain = calculate_gain('relu') = sqrt(2); OIHW weights.
    gain = math.sqrt(2.0)
    fan = C * 3 * 3
    bound = gain * math.sqrt(6.0 / (fan + fan))
    w1 = jax.random.uniform(k1, (C, C, 3, 3), jnp.float32, -bound, bound)
    w2 = jax.random.uniform(k2, (C, C, 3, 3), jnp.float32, -bound, bound)
    bias_bound = 1.0 / math.sqrt(fan)     # PyTorch default conv bias init range
    b1 = jax.random.uniform(k3, (C,), jnp.float32, -bias_bound, bias_bound)
    b2 = jax.random.uniform(k4, (C,), jnp.float32, -bias_bound, bias_bound)
    # bn1 affine params and (now parameterized) running stats.
    gamma = 1.0 + 0.1 * jax.random.uniform(k5, (C,), jnp.float32, -1.0, 1.0)
    beta = 0.1 * jax.random.uniform(k6, (C,), jnp.float32, -1.0, 1.0)
    run_mean = 0.1 * jax.random.normal(k7, (C,), jnp.float32)
    run_var = 1.0 + 0.1 * jax.random.uniform(k8, (C,), jnp.float32, 0.0, 1.0)

    params = (gamma, beta, run_mean, run_var, w1, b1, w2, b2)

    ref = jax.block_until_ready(bottleneck_reference(x, params))

    # f32 MXU path (default) — tight tolerance against HIGHEST-precision reference.
    out_f32 = jax.block_until_ready(
        bottleneck_forward(x, params, compute_dtype=jnp.float32))
    np.testing.assert_allclose(np.asarray(out_f32), np.asarray(ref),
                               rtol=1e-4, atol=1e-4)

    # bf16 MXU path (recommended on v6e/v7x) — f32 accumulation/residual,
    # tolerance loosened for bf16 operand rounding.
    out_bf16 = jax.block_until_ready(
        bottleneck_forward(x, params, compute_dtype=jnp.bfloat16))
    np.testing.assert_allclose(np.asarray(out_bf16), np.asarray(ref),
                               rtol=5e-2, atol=1e-1)

    print("KERNEL_OK")
</pallas_src>

<mosaic_0001>
module attributes {stable_mosaic.version = 11 : i64} {
  func.func @kernel(%arg0: i32, %arg1: memref<1x4x256xf32, #tpu.memory_space<vmem>>, %arg2: memref<1x256xi32, #tpu.memory_space<vmem>>, %arg3: memref<4x1xf32, #tpu.memory_space<vmem>>, %arg4: memref<4x1xf32, #tpu.memory_space<vmem>>, %arg5: memref<4x36xf32, #tpu.memory_space<vmem>>, %arg6: memref<4x1xf32, #tpu.memory_space<vmem>>, %arg7: memref<4x36xf32, #tpu.memory_space<vmem>>, %arg8: memref<4x1xf32, #tpu.memory_space<vmem>>, %arg9: memref<1x4x256xf32, #tpu.memory_space<vmem>>, %arg10: memref<4x512xf32, #tpu.memory_space<vmem>>, %arg11: memref<36x256xf32, #tpu.memory_space<vmem>>) attributes {dimension_semantics = [#tpu.dimension_semantics<parallel>], iteration_bounds = array<i64: 2>, scalar_prefetch = 0 : i64, scratch_operands = 2 : i64, tpu.core_type = #tpu.core_type<tc>, window_params = [{transform_indices = @transform_0, window_bounds = array<i64: 1, 4, 256>}, {pipeline_mode = #tpu.pipeline_mode<synchronous>, transform_indices = @transform_1, window_bounds = array<i64: 1, 256>}, {pipeline_mode = #tpu.pipeline_mode<synchronous>, transform_indices = @transform_2, window_bounds = array<i64: 4, 1>}, {pipeline_mode = #tpu.pipeline_mode<synchronous>, transform_indices = @transform_3, window_bounds = array<i64: 4, 1>}, {pipeline_mode = #tpu.pipeline_mode<synchronous>, transform_indices = @transform_4, window_bounds = array<i64: 4, 36>}, {pipeline_mode = #tpu.pipeline_mode<synchronous>, transform_indices = @transform_5, window_bounds = array<i64: 4, 1>}, {pipeline_mode = #tpu.pipeline_mode<synchronous>, transform_indices = @transform_6, window_bounds = array<i64: 4, 36>}, {pipeline_mode = #tpu.pipeline_mode<synchronous>, transform_indices = @transform_7, window_bounds = array<i64: 4, 1>}, {transform_indices = @transform_8, window_bounds = array<i64: 1, 4, 256>}]} {
    %cst = arith.constant 0.000000e+00 : f32
    %0 = vector.broadcast %cst : f32 to vector<4x128xf32>
    %c0 = arith.constant 0 : index
    %c0_0 = arith.constant 0 : index
    %1 = vector.load %arg10[%c0, %c0_0] : memref<4x512xf32, #tpu.memory_space<vmem>>, vector<4x128xf32>
    tpu.vector_store %arg10[%c0, %c0_0], %0 {strides = array<i32>} : memref<4x512xf32, #tpu.memory_space<vmem>>, vector<4x128xf32>,
    %c0_1 = arith.constant 0 : index
    %c384 = arith.constant 384 : index
    %2 = vector.load %arg10[%c0_1, %c384] : memref<4x512xf32, #tpu.memory_space<vmem>>, vector<4x128xf32>
    tpu.vector_store %arg10[%c0_1, %c384], %0 {strides = array<i32>} : memref<4x512xf32, #tpu.memory_space<vmem>>, vector<4x128xf32>,
    %c0_2 = arith.constant 0 : index
    %c0_3 = arith.constant 0 : index
    %c0_4 = arith.constant 0 : index
    %3 = vector.load %arg1[%c0_2, %c0_3, %c0_4] : memref<1x4x256xf32, #tpu.memory_space<vmem>>, vector<1x4x256xf32>
    %4 = vector.shape_cast %3 : vector<1x4x256xf32> to vector<4x256xf32>
    %c0_5 = arith.constant 0 : index
    %c0_6 = arith.constant 0 : index
    %5 = vector.load %arg2[%c0_5, %c0_6] : memref<1x256xi32, #tpu.memory_space<vmem>>, vector<1x256xi32>
    %c0_7 = arith.constant 0 : index
    %c0_8 = arith.constant 0 : index
    %6 = vector.load %arg3[%c0_7, %c0_8] : memref<4x1xf32, #tpu.memory_space<vmem>>, vector<4x1xf32>
    %7 = vector.broadcast %6 : vector<4x1xf32> to vector<4x256xf32>
    %8 = arith.mulf %4, %7 : vector<4x256xf32>
    %c0_9 = arith.constant 0 : index
    %c0_10 = arith.constant 0 : index
    %9 = vector.load %arg4[%c0_9, %c0_10] : memref<4x1xf32, #tpu.memory_space<vmem>>, vector<4x1xf32>
    %10 = vector.broadcast %9 : vector<4x1xf32> to vector<4x256xf32>
    %11 = arith.addf %8, %10 : vector<4x256xf32>
    %cst_11 = arith.constant 0.000000e+00 : f32
    %12 = vector.broadcast %cst_11 : f32 to vector<4x256xf32>
    %13 = arith.maximumf %11, %12 : vector<4x256xf32>
    %c0_12 = arith.constant 0 : index
    %c128 = arith.constant 128 : index
    %14 = vector.load %arg10[%c0_12, %c128] : memref<4x512xf32, #tpu.memory_space<vmem>>, vector<4x256xf32>
    tpu.vector_store %arg10[%c0_12, %c128], %13 {strides = array<i32>} : memref<4x512xf32, #tpu.memory_space<vmem>>, vector<4x256xf32>,
    %c0_13 = arith.constant 0 : index
    %c111 = arith.constant 111 : index
    %15 = vector.load %arg10[%c0_13, %c111] : memref<4x512xf32, #tpu.memory_space<vmem>>, vector<4x256xf32>
    %c1_i32 = arith.constant 1 : i32
    %16 = vector.broadcast %c1_i32 : i32 to vector<1x256xi32>
    %17 = arith.cmpi sge, %5, %16 : vector<1x256xi32>
    %cst_14 = arith.constant 0.000000e+00 : f32
    %18 = vector.shape_cast %17 : vector<1x256xi1> to vector<1x256xi1>
    %19 = vector.broadcast %18 : vector<1x256xi1> to vector<4x256xi1>
    %20 = vector.broadcast %cst_14 : f32 to vector<4x256xf32>
    %21 = arith.select %19, %15, %20 : vector<4x256xi1>, vector<4x256xf32>
    %c0_15 = arith.constant 0 : index
    %c0_16 = arith.constant 0 : index
    %22 = vector.load %arg11[%c0_15, %c0_16] : memref<36x256xf32, #tpu.memory_space<vmem>>, vector<4x256xf32>
    tpu.vector_store %arg11[%c0_15, %c0_16], %21 {strides = array<i32>} : memref<36x256xf32, #tpu.memory_space<vmem>>, vector<4x256xf32>,
    %c0_17 = arith.constant 0 : index
    %c112 = arith.constant 112 : index
    %23 = vector.load %arg10[%c0_17, %c112] : memref<4x512xf32, #tpu.memory_space<vmem>>, vector<4x256xf32>
    %c4 = arith.constant 4 : index
    %c0_18 = arith.constant 0 : index
    %24 = vector.load %arg11[%c4, %c0_18] : memref<36x256xf32, #tpu.memory_space<vmem>>, vector<4x256xf32>
    tpu.vector_store %arg11[%c4, %c0_18], %23 {strides = array<i32>} : memref<36x256xf32, #tpu.memory_space<vmem>>, vector<4x256xf32>,
    %c0_19 = arith.constant 0 : index
    %c113 = arith.constant 113 : index
    %25 = vector.load %arg10[%c0_19, %c113] : memref<4x512xf32, #tpu.memory_space<vmem>>, vector<4x256xf32>
    %c15_i32 = arith.constant 15 : i32
    %26 = vector.broadcast %c15_i32 : i32 to vector<1x256xi32>
    %27 = arith.cmpi slt, %5, %26 : vector<1x256xi32>
    %cst_20 = arith.constant 0.000000e+00 : f32
    %28 = vector.shape_cast %27 : vector<1x256xi1> to vector<1x256xi1>
    %29 = vector.broadcast %28 : vector<1x256xi1> to vector<4x256xi1>
    %30 = vector.broadcast %cst_20 : f32 to vector<4x256xf32>
    %31 = arith.select %29, %25, %30 : vector<4x256xi1>, vector<4x256xf32>
    %c8 = arith.constant 8 : index
    %c0_21 = arith.constant 0 : index
    %32 = vector.load %arg11[%c8, %c0_21] : memref<36x256xf32, #tpu.memory_space<vmem>>, vector<4x256xf32>
    tpu.vector_store %arg11[%c8, %c0_21], %31 {strides = array<i32>} : memref<36x256xf32, #tpu.memory_space<vmem>>, vector<4x256xf32>,
    %c0_22 = arith.constant 0 : index
    %c127 = arith.constant 127 : index
    %33 = vector.load %arg10[%c0_22, %c127] : memref<4x512xf32, #tpu.memory_space<vmem>>, vector<4x256xf32>
    %c1_i32_23 = arith.constant 1 : i32
    %34 = vector.broadcast %c1_i32_23 : i32 to vector<1x256xi32>
    %35 = arith.cmpi sge, %5, %34 : vector<1x256xi32>
    %cst_24 = arith.constant 0.000000e+00 : f32
    %36 = vector.shape_cast %35 : vector<1x256xi1> to vector<1x256xi1>
    %37 = vector.broadcast %36 : vector<1x256xi1> to vector<4x256xi1>
    %38 = vector.broadcast %cst_24 : f32 to vector<4x256xf32>
    %39 = arith.select %37, %33, %38 : vector<4x256xi1>, vector<4x256xf32>
    %c12 = arith.constant 12 : index
    %c0_25 = arith.constant 0 : index
    %40 = vector.load %arg11[%c12, %c0_25] : memref<36x256xf32, #tpu.memory_space<vmem>>, vector<4x256xf32>
    tpu.vector_store %arg11[%c12, %c0_25], %39 {strides = array<i32>} : memref<36x256xf32, #tpu.memory_space<vmem>>, vector<4x256xf32>,
    %c0_26 = arith.constant 0 : index
    %c128_27 = arith.constant 128 : index
    %41 = vector.load %arg10[%c0_26, %c128_27] : memref<4x512xf32, #tpu.memory_space<vmem>>, vector<4x256xf32>
    %c16 = arith.constant 16 : index
    %c0_28 = arith.constant 0 : index
    %42 = vector.load %arg11[%c16, %c0_28] : memref<36x256xf32, #tpu.memory_space<vmem>>, vector<4x256xf32>
    tpu.vector_store %arg11[%c16, %c0_28], %41 {strides = array<i32>} : memref<36x256xf32, #tpu.memory_space<vmem>>, vector<4x256xf32>,
    %c0_29 = arith.constant 0 : index
    %c129 = arith.constant 129 : index
    %43 = vector.load %arg10[%c0_29, %c129] : memref<4x512xf32, #tpu.memory_space<vmem>>, vector<4x256xf32>
    %c15_i32_30 = arith.constant 15 : i32
    %44 = vector.broadcast %c15_i32_30 : i32 to vector<1x256xi32>
    %45 = arith.cmpi slt, %5, %44 : vector<1x256xi32>
    %cst_31 = arith.constant 0.000000e+00 : f32
    %46 = vector.shape_cast %45 : vector<1x256xi1> to vector<1x256xi1>
    %47 = vector.broadcast %46 : vector<1x256xi1> to vector<4x256xi1>
    %48 = vector.broadcast %cst_31 : f32 to vector<4x256xf32>
    %49 = arith.select %47, %43, %48 : vector<4x256xi1>, vector<4x256xf32>
    %c20 = arith.constant 20 : index
    %c0_32 = arith.constant 0 : index
    %50 = vector.load %arg11[%c20, %c0_32] : memref<36x256xf32, #tpu.memory_space<vmem>>, vector<4x256xf32>
    tpu.vector_store %arg11[%c20, %c0_32], %49 {strides = array<i32>} : memref<36x256xf32, #tpu.memory_space<vmem>>, vector<4x256xf32>,
    %c0_33 = arith.constant 0 : index
    %c143 = arith.constant 143 : index
    %51 = vector.load %arg10[%c0_33, %c143] : memref<4x512xf32, #tpu.memory_space<vmem>>, vector<4x256xf32>
    %c1_i32_34 = arith.constant 1 : i32
    %52 = vector.broadcast %c1_i32_34 : i32 to vector<1x256xi32>
    %53 = arith.cmpi sge, %5, %52 : vector<1x256xi32>
    %cst_35 = arith.constant 0.000000e+00 : f32
    %54 = vector.shape_cast %53 : vector<1x256xi1> to vector<1x256xi1>
    %55 = vector.broadcast %54 : vector<1x256xi1> to vector<4x256xi1>
    %56 = vector.broadcast %cst_35 : f32 to vector<4x256xf32>
    %57 = arith.select %55, %51, %56 : vector<4x256xi1>, vector<4x256xf32>
    %c24 = arith.constant 24 : index
    %c0_36 = arith.constant 0 : index
    %58 = vector.load %arg11[%c24, %c0_36] : memref<36x256xf32, #tpu.memory_space<vmem>>, vector<4x256xf32>
    tpu.vector_store %arg11[%c24, %c0_36], %57 {strides = array<i32>} : memref<36x256xf32, #tpu.memory_space<vmem>>, vector<4x256xf32>,
    %c0_37 = arith.constant 0 : index
    %c144 = arith.constant 144 : index
    %59 = vector.load %arg10[%c0_37, %c144] : memref<4x512xf32, #tpu.memory_space<vmem>>, vector<4x256xf32>
    %c28 = arith.constant 28 : index
    %c0_38 = arith.constant 0 : index
    %60 = vector.load %arg11[%c28, %c0_38] : memref<36x256xf32, #tpu.memory_space<vmem>>, vector<4x256xf32>
    tpu.vector_store %arg11[%c28, %c0_38], %59 {strides = array<i32>} : memref<36x256xf32, #tpu.memory_space<vmem>>, vector<4x256xf32>,
    %c0_39 = arith.constant 0 : index
    %c145 = arith.constant 145 : index
    %61 = vector.load %arg10[%c0_39, %c145] : memref<4x512xf32, #tpu.memory_space<vmem>>, vector<4x256xf32>
    %c15_i32_40 = arith.constant 15 : i32
    %62 = vector.broadcast %c15_i32_40 : i32 to vector<1x256xi32>
    %63 = arith.cmpi slt, %5, %62 : vector<1x256xi32>
    %cst_41 = arith.constant 0.000000e+00 : f32
    %64 = vector.shape_cast %63 : vector<1x256xi1> to vector<1x256xi1>
    %65 = vector.broadcast %64 : vector<1x256xi1> to vector<4x256xi1>
    %66 = vector.broadcast %cst_41 : f32 to vector<4x256xf32>
    %67 = arith.select %65, %61, %66 : vector<4x256xi1>, vector<4x256xf32>
    %c32 = arith.constant 32 : index
    %c0_42 = arith.constant 0 : index
    %68 = vector.load %arg11[%c32, %c0_42] : memref<36x256xf32, #tpu.memory_space<vmem>>, vector<4x256xf32>
    tpu.vector_store %arg11[%c32, %c0_42], %67 {strides = array<i32>} : memref<36x256xf32, #tpu.memory_space<vmem>>, vector<4x256xf32>,
    %c0_43 = arith.constant 0 : index
    %c0_44 = arith.constant 0 : index
    %69 = vector.load %arg5[%c0_43, %c0_44] : memref<4x36xf32, #tpu.memory_space<vmem>>, vector<4x36xf32>
    %c0_45 = arith.constant 0 : index
    %c0_46 = arith.constant 0 : index
    %70 = vector.load %arg11[%c0_45, %c0_46] : memref<36x256xf32, #tpu.memory_space<vmem>>, vector<36x256xf32>
    %cst_47 = arith.constant dense<0.000000e+00> : vector<4x256xf32>
    %71 = tpu.matmul %69, %70, %cst_47 {dimension_numbers = #tpu.dot_dimension_numbers<[1], [0], [0], [1], [0, 0, 1, 1], [], []>} : vector<4x36xf32>, vector<36x256xf32>, vector<4x256xf32> -> vector<4x256xf32>
    %c0_48 = arith.constant 0 : index
    %c0_49 = arith.constant 0 : index
    %72 = vector.load %arg6[%c0_48, %c0_49] : memref<4x1xf32, #tpu.memory_space<vmem>>, vector<4x1xf32>
    %73 = vector.broadcast %72 : vector<4x1xf32> to vector<4x256xf32>
    %74 = arith.addf %71, %73 : vector<4x256xf32>
    %cst_50 = arith.constant 0.000000e+00 : f32
    %75 = vector.broadcast %cst_50 : f32 to vector<4x256xf32>
    %76 = arith.maximumf %74, %75 : vector<4x256xf32>
    %c0_51 = arith.constant 0 : index
    %c128_52 = arith.constant 128 : index
    %77 = vector.load %arg10[%c0_51, %c128_52] : memref<4x512xf32, #tpu.memory_space<vmem>>, vector<4x256xf32>
    tpu.vector_store %arg10[%c0_51, %c128_52], %76 {strides = array<i32>} : memref<4x512xf32, #tpu.memory_space<vmem>>, vector<4x256xf32>,
    %c0_53 = arith.constant 0 : index
    %c111_54 = arith.constant 111 : index
    %78 = vector.load %arg10[%c0_53, %c111_54] : memref<4x512xf32, #tpu.memory_space<vmem>>, vector<4x256xf32>
    %c1_i32_55 = arith.constant 1 : i32
    %79 = vector.broadcast %c1_i32_55 : i32 to vector<1x256xi32>
    %80 = arith.cmpi sge, %5, %79 : vector<1x256xi32>
    %cst_56 = arith.constant 0.000000e+00 : f32
    %81 = vector.shape_cast %80 : vector<1x256xi1> to vector<1x256xi1>
    %82 = vector.broadcast %81 : vector<1x256xi1> to vector<4x256xi1>
    %83 = vector.broadcast %cst_56 : f32 to vector<4x256xf32>
    %84 = arith.select %82, %78, %83 : vector<4x256xi1>, vector<4x256xf32>
    %c0_57 = arith.constant 0 : index
    %c0_58 = arith.constant 0 : index
    %85 = vector.load %arg11[%c0_57, %c0_58] : memref<36x256xf32, #tpu.memory_space<vmem>>, vector<4x256xf32>
    tpu.vector_store %arg11[%c0_57, %c0_58], %84 {strides = array<i32>} : memref<36x256xf32, #tpu.memory_space<vmem>>, vector<4x256xf32>,
    %c0_59 = arith.constant 0 : index
    %c112_60 = arith.constant 112 : index
    %86 = vector.load %arg10[%c0_59, %c112_60] : memref<4x512xf32, #tpu.memory_space<vmem>>, vector<4x256xf32>
    %c4_61 = arith.constant 4 : index
    %c0_62 = arith.constant 0 : index
    %87 = vector.load %arg11[%c4_61, %c0_62] : memref<36x256xf32, #tpu.memory_space<vmem>>, vector<4x256xf32>
    tpu.vector_store %arg11[%c4_61, %c0_62], %86 {strides = array<i32>} : memref<36x256xf32, #tpu.memory_space<vmem>>, vector<4x256xf32>,
    %c0_63 = arith.constant 0 : index
    %c113_64 = arith.constant 113 : index
    %88 = vector.load %arg10[%c0_63, %c113_64] : memref<4x512xf32, #tpu.memory_space<vmem>>, vector<4x256xf32>
    %c15_i32_65 = arith.constant 15 : i32
    %89 = vector.broadcast %c15_i32_65 : i32 to vector<1x256xi32>
    %90 = arith.cmpi slt, %5, %89 : vector<1x256xi32>
    %cst_66 = arith.constant 0.000000e+00 : f32
    %91 = vector.shape_cast %90 : vector<1x256xi1> to vector<1x256xi1>
    %92 = vector.broadcast %91 : vector<1x256xi1> to vector<4x256xi1>
    %93 = vector.broadcast %cst_66 : f32 to vector<4x256xf32>
    %94 = arith.select %92, %88, %93 : vector<4x256xi1>, vector<4x256xf32>
    %c8_67 = arith.constant 8 : index
    %c0_68 = arith.constant 0 : index
    %95 = vector.load %arg11[%c8_67, %c0_68] : memref<36x256xf32, #tpu.memory_space<vmem>>, vector<4x256xf32>
    tpu.vector_store %arg11[%c8_67, %c0_68], %94 {strides = array<i32>} : memref<36x256xf32, #tpu.memory_space<vmem>>, vector<4x256xf32>,
    %c0_69 = arith.constant 0 : index
    %c127_70 = arith.constant 127 : index
    %96 = vector.load %arg10[%c0_69, %c127_70] : memref<4x512xf32, #tpu.memory_space<vmem>>, vector<4x256xf32>
    %c1_i32_71 = arith.constant 1 : i32
    %97 = vector.broadcast %c1_i32_71 : i32 to vector<1x256xi32>
    %98 = arith.cmpi sge, %5, %97 : vector<1x256xi32>
    %cst_72 = arith.constant 0.000000e+00 : f32
    %99 = vector.shape_cast %98 : vector<1x256xi1> to vector<1x256xi1>
    %100 = vector.broadcast %99 : vector<1x256xi1> to vector<4x256xi1>
    %101 = vector.broadcast %cst_72 : f32 to vector<4x256xf32>
    %102 = arith.select %100, %96, %101 : vector<4x256xi1>, vector<4x256xf32>
    %c12_73 = arith.constant 12 : index
    %c0_74 = arith.constant 0 : index
    %103 = vector.load %arg11[%c12_73, %c0_74] : memref<36x256xf32, #tpu.memory_space<vmem>>, vector<4x256xf32>
    tpu.vector_store %arg11[%c12_73, %c0_74], %102 {strides = array<i32>} : memref<36x256xf32, #tpu.memory_space<vmem>>, vector<4x256xf32>,
    %c0_75 = arith.constant 0 : index
    %c128_76 = arith.constant 128 : index
    %104 = vector.load %arg10[%c0_75, %c128_76] : memref<4x512xf32, #tpu.memory_space<vmem>>, vector<4x256xf32>
    %c16_77 = arith.constant 16 : index
    %c0_78 = arith.constant 0 : index
    %105 = vector.load %arg11[%c16_77, %c0_78] : memref<36x256xf32, #tpu.memory_space<vmem>>, vector<4x256xf32>
    tpu.vector_store %arg11[%c16_77, %c0_78], %104 {strides = array<i32>} : memref<36x256xf32, #tpu.memory_space<vmem>>, vector<4x256xf32>,
    %c0_79 = arith.constant 0 : index
    %c129_80 = arith.constant 129 : index
    %106 = vector.load %arg10[%c0_79, %c129_80] : memref<4x512xf32, #tpu.memory_space<vmem>>, vector<4x256xf32>
    %c15_i32_81 = arith.constant 15 : i32
    %107 = vector.broadcast %c15_i32_81 : i32 to vector<1x256xi32>
    %108 = arith.cmpi slt, %5, %107 : vector<1x256xi32>
    %cst_82 = arith.constant 0.000000e+00 : f32
    %109 = vector.shape_cast %108 : vector<1x256xi1> to vector<1x256xi1>
    %110 = vector.broadcast %109 : vector<1x256xi1> to vector<4x256xi1>
    %111 = vector.broadcast %cst_82 : f32 to vector<4x256xf32>
    %112 = arith.select %110, %106, %111 : vector<4x256xi1>, vector<4x256xf32>
    %c20_83 = arith.constant 20 : index
    %c0_84 = arith.constant 0 : index
    %113 = vector.load %arg11[%c20_83, %c0_84] : memref<36x256xf32, #tpu.memory_space<vmem>>, vector<4x256xf32>
    tpu.vector_store %arg11[%c20_83, %c0_84], %112 {strides = array<i32>} : memref<36x256xf32, #tpu.memory_space<vmem>>, vector<4x256xf32>,
    %c0_85 = arith.constant 0 : index
    %c143_86 = arith.constant 143 : index
    %114 = vector.load %arg10[%c0_85, %c143_86] : memref<4x512xf32, #tpu.memory_space<vmem>>, vector<4x256xf32>
    %c1_i32_87 = arith.constant 1 : i32
    %115 = vector.broadcast %c1_i32_87 : i32 to vector<1x256xi32>
    %116 = arith.cmpi sge, %5, %115 : vector<1x256xi32>
    %cst_88 = arith.constant 0.000000e+00 : f32
    %117 = vector.shape_cast %116 : vector<1x256xi1> to vector<1x256xi1>
    %118 = vector.broadcast %117 : vector<1x256xi1> to vector<4x256xi1>
    %119 = vector.broadcast %cst_88 : f32 to vector<4x256xf32>
    %120 = arith.select %118, %114, %119 : vector<4x256xi1>, vector<4x256xf32>
    %c24_89 = arith.constant 24 : index
    %c0_90 = arith.constant 0 : index
    %121 = vector.load %arg11[%c24_89, %c0_90] : memref<36x256xf32, #tpu.memory_space<vmem>>, vector<4x256xf32>
    tpu.vector_store %arg11[%c24_89, %c0_90], %120 {strides = array<i32>} : memref<36x256xf32, #tpu.memory_space<vmem>>, vector<4x256xf32>,
    %c0_91 = arith.constant 0 : index
    %c144_92 = arith.constant 144 : index
    %122 = vector.load %arg10[%c0_91, %c144_92] : memref<4x512xf32, #tpu.memory_space<vmem>>, vector<4x256xf32>
    %c28_93 = arith.constant 28 : index
    %c0_94 = arith.constant 0 : index
    %123 = vector.load %arg11[%c28_93, %c0_94] : memref<36x256xf32, #tpu.memory_space<vmem>>, vector<4x256xf32>
    tpu.vector_store %arg11[%c28_93, %c0_94], %122 {strides = array<i32>} : memref<36x256xf32, #tpu.memory_space<vmem>>, vector<4x256xf32>,
    %c0_95 = arith.constant 0 : index
    %c145_96 = arith.constant 145 : index
    %124 = vector.load %arg10[%c0_95, %c145_96] : memref<4x512xf32, #tpu.memory_space<vmem>>, vector<4x256xf32>
    %c15_i32_97 = arith.constant 15 : i32
    %125 = vector.broadcast %c15_i32_97 : i32 to vector<1x256xi32>
    %126 = arith.cmpi slt, %5, %125 : vector<1x256xi32>
    %cst_98 = arith.constant 0.000000e+00 : f32
    %127 = vector.shape_cast %126 : vector<1x256xi1> to vector<1x256xi1>
    %128 = vector.broadcast %127 : vector<1x256xi1> to vector<4x256xi1>
    %129 = vector.broadcast %cst_98 : f32 to vector<4x256xf32>
    %130 = arith.select %128, %124, %129 : vector<4x256xi1>, vector<4x256xf32>
    %c32_99 = arith.constant 32 : index
    %c0_100 = arith.constant 0 : index
    %131 = vector.load %arg11[%c32_99, %c0_100] : memref<36x256xf32, #tpu.memory_space<vmem>>, vector<4x256xf32>
    tpu.vector_store %arg11[%c32_99, %c0_100], %130 {strides = array<i32>} : memref<36x256xf32, #tpu.memory_space<vmem>>, vector<4x256xf32>,
    %c0_101 = arith.constant 0 : index
    %c0_102 = arith.constant 0 : index
    %132 = vector.load %arg7[%c0_101, %c0_102] : memref<4x36xf32, #tpu.memory_space<vmem>>, vector<4x36xf32>
    %c0_103 = arith.constant 0 : index
    %c0_104 = arith.constant 0 : index
    %133 = vector.load %arg11[%c0_103, %c0_104] : memref<36x256xf32, #tpu.memory_space<vmem>>, vector<36x256xf32>
    %cst_105 = arith.constant dense<0.000000e+00> : vector<4x256xf32>
    %134 = tpu.matmul %132, %133, %cst_105 {dimension_numbers = #tpu.dot_dimension_numbers<[1], [0], [0], [1], [0, 0, 1, 1], [], []>} : vector<4x36xf32>, vector<36x256xf32>, vector<4x256xf32> -> vector<4x256xf32>
    %c0_106 = arith.constant 0 : index
    %c0_107 = arith.constant 0 : index
    %135 = vector.load %arg8[%c0_106, %c0_107] : memref<4x1xf32, #tpu.memory_space<vmem>>, vector<4x1xf32>
    %136 = vector.broadcast %135 : vector<4x1xf32> to vector<4x256xf32>
    %137 = arith.addf %134, %136 : vector<4x256xf32>
    %138 = arith.addf %137, %4 : vector<4x256xf32>
    %c0_108 = arith.constant 0 : index
    %c0_109 = arith.constant 0 : index
    %c0_110 = arith.constant 0 : index
    %139 = vector.load %arg9[%c0_108, %c0_109, %c0_110] : memref<1x4x256xf32, #tpu.memory_space<vmem>>, vector<1x4x256xf32>
    %140 = vector.shape_cast %139 : vector<1x4x256xf32> to vector<4x256xf32>
    %141 = vector.shape_cast %138 : vector<4x256xf32> to vector<1x4x256xf32>
    tpu.vector_store %arg9[%c0_108, %c0_109, %c0_110], %141 {strides = array<i32>} : memref<1x4x256xf32, #tpu.memory_space<vmem>>, vector<1x4x256xf32>,
    return
  }
  func.func @transform_0(%arg0: i32) -> (i32, i32, i32) {
    %c0_i32 = arith.constant 0 : i32
    %c0_i32_0 = arith.constant 0 : i32
    %c0_i32_1 = arith.constant 0 : i32
    return %arg0, %c0_i32, %c0_i32_0 : i32, i32, i32
  }
  func.func @transform_1(%arg0: i32) -> (i32, i32) {
    %c0_i32 = arith.constant 0 : i32
    %c0_i32_0 = arith.constant 0 : i32
    %c0_i32_1 = arith.constant 0 : i32
    return %c0_i32, %c0_i32_0 : i32, i32
  }
  func.func @transform_2(%arg0: i32) -> (i32, i32) {
    %c0_i32 = arith.constant 0 : i32
    %c0_i32_0 = arith.constant 0 : i32
    %c0_i32_1 = arith.constant 0 : i32
    return %c0_i32, %c0_i32_0 : i32, i32
  }
  func.func @transform_3(%arg0: i32) -> (i32, i32) {
    %c0_i32 = arith.constant 0 : i32
    %c0_i32_0 = arith.constant 0 : i32
    %c0_i32_1 = arith.constant 0 : i32
    return %c0_i32, %c0_i32_0 : i32, i32
  }
  func.func @transform_4(%arg0: i32) -> (i32, i32) {
    %c0_i32 = arith.constant 0 : i32
    %c0_i32_0 = arith.constant 0 : i32
    %c0_i32_1 = arith.constant 0 : i32
    return %c0_i32, %c0_i32_0 : i32, i32
  }
  func.func @transform_5(%arg0: i32) -> (i32, i32) {
    %c0_i32 = arith.constant 0 : i32
    %c0_i32_0 = arith.constant 0 : i32
    %c0_i32_1 = arith.constant 0 : i32
    return %c0_i32, %c0_i32_0 : i32, i32
  }
  func.func @transform_6(%arg0: i32) -> (i32, i32) {
    %c0_i32 = arith.constant 0 : i32
    %c0_i32_0 = arith.constant 0 : i32
    %c0_i32_1 = arith.constant 0 : i32
    return %c0_i32, %c0_i32_0 : i32, i32
  }
  func.func @transform_7(%arg0: i32) -> (i32, i32) {
    %c0_i32 = arith.constant 0 : i32
    %c0_i32_0 = arith.constant 0 : i32
    %c0_i32_1 = arith.constant 0 : i32
    return %c0_i32, %c0_i32_0 : i32, i32
  }
  func.func @transform_8(%arg0: i32) -> (i32, i32, i32) {
    %c0_i32 = arith.constant 0 : i32
    %c0_i32_0 = arith.constant 0 : i32
    %c0_i32_1 = arith.constant 0 : i32
    return %arg0, %c0_i32, %c0_i32_0 : i32, i32, i32
  }
}

</mosaic_0001>

<bundles_post_ra>
// kernel: tpu_custom_call.1
= control target key start
LH: loop header
LB: loop body
LE: loop exit
PB: predicated region body
PF: predicated region fallthrough
CT: control target
= control target key end

     0   :  { %13 = vsyncpa [#allocation5], 0  ;;  %s1489_s0 = inlined_call_operand.vmem [shape: f32[2,4,256], index: 0, kind: input, shape index: {}]   ;;  %s1490_s1 = inlined_call_operand.vmem [shape: s32[1,256], index: 1, kind: input, shape index: {}]   ;;  %s1491_s2 = inlined_call_operand.vmem [shape: f32[4,1], index: 2, kind: input, shape index: {}]   ;;  %s1492_s3 = inlined_call_operand.vmem [shape: f32[4,1], index: 3, kind: input, shape index: {}]   ;;  %s1493_s4 = inlined_call_operand.vmem [shape: f32[4,36], index: 4, kind: input, shape index: {}]   ;;  %s1494_s5 = inlined_call_operand.vmem [shape: f32[4,1], index: 5, kind: input, shape index: {}]   ;;  %s1495_s6 = inlined_call_operand.vmem [shape: f32[4,36], index: 6, kind: input, shape index: {}]   ;;  %s1496_s7 = inlined_call_operand.vmem [shape: f32[4,1], index: 7, kind: input, shape index: {}]   ;;  %s1497_s8 = inlined_call_operand.hbm [shape: f32[2,4,256], index: 8, kind: output, shape index: {}]  }
   0x1   :  { %15 = vsyncpa [#allocation5 + $0x1], 0  ;;  %s1213_s27 = smov 0   ;;  %s1215_s28 = smov 0  }
   0x2   :  { %s1217_s29 = smov 0   ;;  %s1219_s30 = smov 0  }
   0x3 LB: > { %s1234_s9 = sadd.s32 4294967295, %s1154_s30   ;;  %s993_s10 = sadd.s32 4294967294, %s1154_s30   ;;  %s1154_s30 = sphi %s1219_s30, %s1503_s30   ;;  %s1150_s29 = sphi %s1217_s29, %s1502_s29   ;;  %s1146_s28 = sphi %s1215_s28, %s1501_s28   ;;  %s1142_s27 = sphi %s1213_s27, %s1500_s27  }
   0x4   : > { %s1238_s11 = sadd.s32 1, %s1154_s30   ;;  %s201_s12 = sadd.s32 1, %s1150_s29 }
   0x5   : > { %s198_s13 = ssub.s32 %s1154_s30, %s1238_s11  ;;  %p211_p0 = scmp.ne.s32.totalorder %s1150_s29, %s1146_s28 }
   0x6   : > { %p199_p1 = scmp.eq.s32.totalorder %s198_s13, 0  ;;  %p212_p2 = scmp.eq.s32.totalorder %s1234_s9, 1 }
   0x7   : > { %p217_p3 = scmp.ne.s32.totalorder %s1146_s28, %s1142_s27  ;;  %p218_p4 = scmp.eq.s32.totalorder %s993_s10, 1 }
   0x8   : > { %s1249_s14 = scalar_select %p199_p1, %s1150_s29, %s201_s12  }
   0x9   : > { %p1251_p5 = por %p212_p2, %p211_p0  ;;  %p1255_p6 = por %p218_p4, %p217_p3 }
   0xa   : > { %p996_p7 = scmp.ge.s32.totalorder %s1154_s30, 1  ;;  %p265_p8 = scmp.lt.s32.totalorder %s1154_s30, 3 }
   0xc   : > { %p266_p9 = pnand %p996_p7, %p265_p8 }
   0xd   : > { %v308_v0 = vld [vmem:[%s1491_s2] sm:$0xf] (!%p266_p9)  ;;  %v1156_v1 = vmov (!%p266_p9), 0   ;;  %v1157_v3 = vmov (!%p266_p9), 0.0   ;;  %s1158_s21 = smov (!%p266_p9), 127   ;;  %s1159_s22 = smov (!%p266_p9), 113   ;;  %v316_v9 = vlaneseq (!%p266_p9) }
   0xe   : > { %269 = sbr.rel (%p266_p9) target bundleno = 954 (0x3ba), region = 52  ;;  %1079 = vset.pattern.permute.xlu0 (!%p266_p9), %v1156_v1  ;;  %1080 = vset.pattern.permute.xlu1 (!%p266_p9), %v1156_v1  ;;  %v322_v2 = vld [vmem:[%s1492_s3] sm:$0xf] (!%p266_p9)  ;;  %305 = vst [vmem:[#allocation2 + $0xc] sm:$0xf] (!%p266_p9), %v1157_v3  ;;  %s1160_s23 = smov (!%p266_p9), 112  }
   0xf   : > { %311 = vperm.xlu0 (!%p266_p9), %1079, %v308_v0   ;;  %304 = vst [vmem:[#allocation2] sm:$0xf] (!%p266_p9), %v1157_v3  ;;  %630 = vmatprep.mubr.f32.mxu0 (!%p266_p9), %v1157_v3  ;;  %p299_p10 = scmp.lt.s32.totalorder (!%p266_p9), %s1234_s9, 1  ;;  %v1161_v7 = vmov (!%p266_p9), 839922192   ;;  %v317_v11 = vshrl.u32 (!%p266_p9), %v316_v9, 7 }
  0x10   : > { %902 = vmatprep.mubr.f32.mxu1 (!%p266_p9), %v1157_v3  ;;  %v314_v8 = vunpack.c.l.s4 (!%p266_p9), %v1161_v7  ;;  %v307_v20 = vld [vmem:[%s1490_s1] sm:$0x3] (!%p266_p9)  ;;  %s1162_s18 = smov (!%p266_p9), 1   ;;  %s1163_s19 = smov (!%p266_p9), 17   ;;  %vm432_vm2 = vcmask (!%p266_p9), 7168   ;;  %vm361_vm5 = vcmask (!%p266_p9), 138240  }
  0x11   : > { %vm340_vm0 = vcmp.ge.s32.totalorder (!%p266_p9), %v307_v20, 1  ;;  %v344_v23 = vsub.s32 (!%p266_p9), 0, %v317_v11  ;;  %v348_v24 = vsub.s32 (!%p266_p9), 1, %v317_v11  ;;  %vm391_vm1 = vcmp.lt.s32.totalorder (!%p266_p9), %v307_v20, 15  ;;  %s1164_s20 = smov (!%p266_p9), 15  }
  0x12   : > { %v315_v10 = vunpack.c.0.s8 (!%p266_p9), %v314_v8  ;;  %v341_v25 = vsel (!%p266_p9), %vm340_vm0, 1, %v1156_v1  ;;  %v392_v30 = vsel (!%p266_p9), %vm391_vm1, 1, %v1156_v1  ;;  %v549_v40 = vld [vmem:[%s1494_s5] sm:$0xf] (!%p266_p9)  ;;  %vm412_vm6 = vcmask (!%p266_p9), 121856  }
  0x13   : > { %325 = vperm.xlu0 (!%p266_p9), %1079, %v322_v2   ;;  %v1281_v26 = vrot.slane (!%p266_p9), %v341_v25, %v344_v23  ;;  %v1283_v27 = vrot.slane (!%p266_p9), %v341_v25, %v348_v24  ;;  %v1289_v32 = vrot.slane (!%p266_p9), %v392_v30, %v344_v23  ;;  %v1291_v33 = vrot.slane (!%p266_p9), %v392_v30, %v348_v24 }
  0x14   : > { %v318_v12 = vsub.s32 (!%p266_p9), %v315_v10, %v317_v11  ;;  %vm511_vm9 = vcmask (!%p266_p9), 916480   ;;  %vm382_vm10 = vcmask (!%p266_p9), 130048   ;;  %vm464_vm11 = vcmask (!%p266_p9), 1039360  }
  0x15   : > { %v454_v4 = vld [vmem:[#allocation2 + $0xc] sm:$0xf]  ;;  %s300_s24 = scalar_select %p299_p10, %s1234_s9, 1  ;;  %vm350_vm3 = vcmp.eq.s32.totalorder %v1281_v26, 1  ;;  %vm351_vm4 = vcmp.eq.s32.totalorder %v1283_v27, 1  ;;  %vm401_vm7 = vcmp.eq.s32.totalorder %v1289_v32, 1 }
  0x16   : > { %462 = vrot.lane.b32.xlu1 %v454_v4, %s1158_s21  ;;  %v480_v5 = vld [vmem:[#allocation2 + $0xc] sm:$0xf]  ;;  %vm402_vm8 = vcmp.eq.s32.totalorder %v1291_v33, 1  ;;  %vm490_vm12 = vcmask 924672   ;;  %vm529_vm13 = vcmask 908288   ;;  %vm559_vm14 = vcmask 1043456  }
  0x17   : > { %v1081_v6 = vld [vmem:[#allocation2 + $0xc] ss:$0 sps:$4 sm:$0xff]   ;;  %488 = vrot.lane.b32.xlu0 %v480_v5, %s1159_s22  ;;  %s1011_s25 = sshll.u32 %s300_s24, 3  ;;  %s1165_s24 = smov 16   ;;  %vm555_vm15 = vcmask 293888  }
  0x18   : > { %s303_s12 = scalar_lea.vmem %s1489_s0, %s1011_s25  ;;  %v519_v39 = vld [vmem:[#allocation2 + $0xc] sm:$0xf]  ;;  %s1166_s25 = smov 111  }
  0x19   : > { %v1275_v15 = vld [vmem:[%s303_s12] sm:$0xff] }
  0x1a   : > { %509 = vrot.lane.b32.xlu1 %v1081_v6, %s1160_s23 }
  0x88   : > { %v463_v41 = vpop.permute.xlu1 %462 }
  0x8c   : > { %v510_v43 = vpop.permute.xlu1 %509 }
  0x8e   : > { %v312_v13 = vpop.permute.xlu0 %311 }
  0x8f   : > { %v319_v14 = vrot.slane %v312_v13, %v318_v12 }
  0x91   : > { %v321_v17 = vmul.f32 %v319_v14, %v1275_v15 }
  0x92   : > { %v326_v16 = vpop.permute.xlu0 %325 }
  0x93   : > { %v333_v18 = vrot.slane %v326_v16, %v318_v12 }
  0x95   : > { %v335_v19 = vadd.f32 %v333_v18, %v321_v17 }
  0x96   : > { %v1313_v42 = vpop.permute.xlu0 %488 }
  0x97   : > { %v336_v21 = vmax.f32 %v335_v19, 0.0 }
  0x99   : > { %337 = vst [vmem:[#allocation2 + $0x4] sm:$0xff] %v336_v21  ;;  %v449_v22 = vcombine.high %v336_v21, %v336_v21  ;;  %451 = vst [vmem:[#allocation3 + $0x20] sm:$0xf] %v336_v21  ;;  %v503_v38 = vcombine.low %v336_v21, %v336_v21 }
  0x9b   : > { %452 = vst [vmem:[#allocation3 + $0x28] sm:$0xf] %v449_v22 }
  0xa0   : > { %v422_v28 = vld [vmem:[#allocation2 + $0x8] sm:$0xf]  ;;  %v421_v29 = vld [vmem:[#allocation2] sm:$0xff] }
  0xa1   : > { %430 = vrot.lane.b32.xlu1 %v422_v28, %s1162_s18  ;;  %426 = vrot.lane.b32.xlu0 %v421_v29, %s1162_s18  ;;  %v339_v31 = vld [vmem:[#allocation2 + $0x8] sm:$0xf]  ;;  %v425_v35 = vcombine.high %v421_v29, %v421_v29  ;;  %v374_v37 = vcombine.low %v421_v29, %v421_v29 }
  0xa2   : > { %v390_v34 = vld [vmem:[#allocation2 + $0x8] sm:$0xf] }
  0xa3   : > { %v1083_v36 = vld [vmem:[#allocation2 + $0x8] ss:$0 sps:$4 sm:$0xff]  }
  0xa5   : > { %359 = vrot.lane.b32.xlu0 %v339_v31, %s1163_s19  ;;  %355 = vrot.lane.b32.xlu1 %v421_v29, %s1163_s19 }
  0xa9   : > { %410 = vrot.lane.b32.xlu0 %v390_v34, %s1164_s20  ;;  %484 = vrot.lane.b32.xlu1 %v336_v21, %s1159_s22 }
  0xad   : > { %378 = vrot.lane.b32.xlu0 %v421_v29, %s1165_s24  ;;  %428 = vrot.lane.b32.xlu1 %v425_v35, %s1162_s18 }
  0xb1   : > { %406 = vrot.lane.b32.xlu0 %v421_v29, %s1164_s20  ;;  %357 = vrot.lane.b32.xlu1 %v425_v35, %s1163_s19 }
  0xb5   : > { %458 = vrot.lane.b32.xlu0 %v336_v21, %s1158_s21  ;;  %408 = vrot.lane.b32.xlu1 %v425_v35, %s1164_s20 }
  0xb9   : > { %507 = vrot.lane.b32.xlu0 %v336_v21, %s1160_s23  ;;  %380 = vrot.lane.b32.xlu1 %v1083_v36, %s1165_s24 }
  0xbd   : > { %460 = vrot.lane.b32.xlu0 %v449_v22, %s1158_s21  ;;  %376 = vrot.lane.b32.xlu1 %v374_v37, %s1165_s24 }
  0xc1   : > { %505 = vrot.lane.b32.xlu0 %v503_v38, %s1160_s23  ;;  %486 = vrot.lane.b32.xlu1 %v449_v22, %s1159_s22 }
  0xc5   : > { %527 = vrot.lane.b32.xlu0 %v519_v39, %s1166_s25  ;;  %525 = vrot.lane.b32.xlu1 %v449_v22, %s1166_s25 }
  0xc9   : > { %552 = vperm.xlu0 %1079, %v549_v40   ;;  %523 = vrot.lane.b32.xlu1 %v336_v21, %s1166_s25 }
 0x113   : > { %v431_v44 = vpop.permute.xlu1 %430  ;;  %v427_v45 = vpop.permute.xlu0 %426 }
 0x117   : > { %v360_v46 = vpop.permute.xlu0 %359  ;;  %v356_v47 = vpop.permute.xlu1 %355 }
 0x11b   : > { %v411_v48 = vpop.permute.xlu0 %410  ;;  %v485_v49 = vpop.permute.xlu1 %484 }
 0x11f   : > { %v379_v50 = vpop.permute.xlu0 %378  ;;  %v429_v51 = vpop.permute.xlu1 %428 }
 0x120   : > { %v433_v52 = vsel %vm432_vm2, %v427_v45, %v429_v51  ;;  %v434_v53 = vsel %vm432_vm2, %v429_v51, %v431_v44  ;;  %v538_v51 = vld [vmem:[%s1493_s4] sm:$0xf] }
 0x121   : > { %v437_v54 = vsel %vm350_vm3, %v433_v52, 0.0  ;;  %v438_v55 = vsel %vm351_vm4, %v434_v53, 0.0  ;;  %v732_v53 = vld [vmem:[#allocation2 + $0xc] sm:$0xf] }
 0x122   : > { %v441_v56 = vrot.slane %v437_v54, 4  ;;  %v442_v57 = vrot.slane %v438_v55, 4  ;;  %v757_v54 = vld [vmem:[#allocation2 + $0xc] sm:$0xf]  ;;  %740 = vrot.lane.b32.xlu0 %v732_v53, %s1158_s21 }
 0x123   : > { %v407_v58 = vpop.permute.xlu0 %406  ;;  %v358_v59 = vpop.permute.xlu1 %357  ;;  %v1085_v55 = vld [vmem:[#allocation2 + $0xc] ss:$0 sps:$4 sm:$0xff]   ;;  %765 = vrot.lane.b32.xlu1 %v757_v54, %s1159_s22 }
 0x124   : > { %445 = vst [vmem:[#allocation3 + $0x10] sm:$0xf0] %v441_v56  ;;  %446 = vst [vmem:[#allocation3 + $0x18] sm:$0xf0] %v442_v57  ;;  %v362_v60 = vsel %vm361_vm5, %v356_v47, %v358_v59  ;;  %v363_v61 = vsel %vm361_vm5, %v358_v59, %v360_v46 }
 0x125   : > { %v366_v62 = vsel %vm350_vm3, %v362_v60, 0.0  ;;  %v367_v63 = vsel %vm351_vm4, %v363_v61, 0.0 }
 0x126   : > { %368 = vst [vmem:[#allocation3] sm:$0xf] %v366_v62  ;;  %369 = vst [vmem:[#allocation3 + $0x8] sm:$0xf] %v367_v63  ;;  %785 = vrot.lane.b32.xlu0 %v1085_v55, %s1160_s23 }
 0x127   : > { %v459_v0 = vpop.permute.xlu0 %458  ;;  %v409_v1 = vpop.permute.xlu1 %408 }
 0x128   : > { %v413_v2 = vsel %vm412_vm6, %v407_v58, %v409_v1  ;;  %v414_v3 = vsel %vm412_vm6, %v409_v1, %v411_v48 }
 0x129   : > { %v417_v4 = vsel %vm401_vm7, %v413_v2, 0.0  ;;  %v418_v5 = vsel %vm402_vm8, %v414_v3, 0.0 }
 0x12a   : > { %419 = vst [vmem:[#allocation3 + $0x10] sm:$0xf] %v417_v4  ;;  %420 = vst [vmem:[#allocation3 + $0x18] sm:$0xf] %v418_v5 }
 0x12b   : > { %v508_v6 = vpop.permute.xlu0 %507  ;;  %v381_v7 = vpop.permute.xlu1 %380 }
 0x12c   : > { %v513_v8 = vsel %vm511_vm9, %v508_v6, %v510_v43  ;;  %v384_v9 = vsel %vm382_vm10, %v379_v50, %v381_v7 }
 0x12d   : > { %517 = vst [vmem:[#allocation3 + $0x38] sm:$0xf0] %v513_v8  ;;  %388 = vst [vmem:[#allocation3 + $0x8] sm:$0xf0] %v384_v9  ;;  %v794_v9 = vld [vmem:[#allocation2 + $0xc] sm:$0xf] }
 0x12f   : > { %v461_v10 = vpop.permute.xlu0 %460  ;;  %v377_v11 = vpop.permute.xlu1 %376 }
 0x130   : > { %v465_v12 = vsel %vm464_vm11, %v459_v0, %v461_v10  ;;  %v466_v13 = vsel %vm464_vm11, %v461_v10, %v463_v41  ;;  %v383_v14 = vsel %vm382_vm10, %v377_v11, %v379_v50  ;;  %v823_v10 = vld [vmem:[%s1496_s7] sm:$0xf] }
 0x131   : > { %v469_v16 = vsel %vm401_vm7, %v465_v12, 0.0  ;;  %v470_v17 = vsel %vm402_vm8, %v466_v13, 0.0  ;;  %387 = vst [vmem:[#allocation3] sm:$0xf0] %v383_v14  ;;  %v542_v28 = vld [vmem:[#allocation3 + $0x18] sm:$0xff]  ;;  %v541_v38 = vld [vmem:[#allocation3 + $0x10] sm:$0xff] }
 0x132   : > { %v473_v18 = vrot.slane %v469_v16, 4  ;;  %v474_v19 = vrot.slane %v470_v17, 4 }
 0x133   : > { %v506_v20 = vpop.permute.xlu0 %505  ;;  %v487_v21 = vpop.permute.xlu1 %486 }
 0x134   : > { %477 = vst [vmem:[#allocation3 + $0x20] sm:$0xf0] %v473_v18  ;;  %478 = vst [vmem:[#allocation3 + $0x28] sm:$0xf0] %v474_v19  ;;  %v512_v22 = vsel %vm511_vm9, %v506_v20, %v508_v6  ;;  %v491_v23 = vsel %vm490_vm12, %v485_v49, %v487_v21  ;;  %v492_v24 = vsel %vm490_vm12, %v487_v21, %v1313_v42  ;;  %v540_v25 = vld [vmem:[#allocation3 + $0x8] sm:$0xff] }
 0x135   : > { %516 = vst [vmem:[#allocation3 + $0x30] sm:$0xf0] %v512_v22  ;;  %v495_v29 = vsel %vm350_vm3, %v491_v23, 0.0  ;;  %v496_v30 = vsel %vm351_vm4, %v492_v24, 0.0  ;;  %v1013_v31 = vpack.c.bf16 %v542_v28, %v540_v25 }
 0x136   : > { %497 = vst [vmem:[#allocation3 + $0x30] sm:$0xf] %v495_v29  ;;  %498 = vst [vmem:[#allocation3 + $0x38] sm:$0xf] %v496_v30 }
 0x137   : > { %v528_v34 = vpop.permute.xlu0 %527  ;;  %1014 = vmatprep.subr.bf16.mxu0 %v1013_v31  ;;  %v526_v35 = vpop.permute.xlu1 %525 }
 0x138   : > { %v531_v36 = vsel %vm529_vm13, %v526_v35, %v528_v34  ;;  %v539_v37 = vld [vmem:[#allocation3] sm:$0xff] }
 0x139   : > { %v535_v39 = vsel %vm402_vm8, %v531_v36, 0.0  ;;  %v1015_v40 = vpack.c.bf16 %v541_v38, %v539_v37 }
 0x13a   : > { %537 = vst [vmem:[#allocation3 + $0x48] sm:$0xf] %v535_v39 }
 0x13b   : > { %1016 = vmatpush1.bf16.msra.mxu0 %v1015_v40  ;;  %v524_v41 = vpop.permute.xlu1 %523  ;;  %v544_v43 = vld [vmem:[#allocation3 + $0x28] sm:$0xff]  ;;  %v543_v46 = vld [vmem:[#allocation3 + $0x20] sm:$0xff] }
 0x13c   : > { %v530_v42 = vsel %vm529_vm13, %v524_v41, %v526_v35 }
 0x13d   : > { %v534_v44 = vsel %vm401_vm7, %v530_v42, 0.0  ;;  %v546_v45 = vld [vmem:[#allocation3 + $0x38] sm:$0xff]  ;;  %v545_v47 = vld [vmem:[#allocation3 + $0x30] sm:$0xff] }
 0x13e   : > { %536 = vst [vmem:[#allocation3 + $0x40] sm:$0xf] %v534_v44  ;;  %v1017_v48 = vpack.c.bf16 %v546_v45, %v544_v43  ;;  %v1019_v49 = vpack.c.bf16 %v545_v47, %v543_v46 }
 0x140   : > { %1018 = vmatprep.subr.bf16.mxu0 %v1017_v48 }
 0x141   : > { %1020 = vmatpush1.bf16.msra.mxu0 %v1019_v49  ;;  %v548_v50 = vld [vmem:[#allocation3 + $0x48] sm:$0xf] }
 0x142   : > { %1000 = vmatprep.subr.msk.mxu0 %vm559_vm14, %v548_v50 }
 0x145   : > { %v547_v52 = vld [vmem:[#allocation3 + $0x40] sm:$0xf] }
 0x146   : > { %1001 = vmatpush1.msk.msra.mxu0 %vm559_vm14, %v547_v52 }
 0x147   : > { %1002 = vmatmul.mubr.msk.f32.vlgmr.msra.gmra.mrb[0].mxu0 %vm555_vm15, %v538_v51 }
 0x148   : > { %v553_v56 = vpop.permute.xlu0 %552 }
 0x194   : > { %v741_v11 = vpop.permute.xlu0 %740 }
 0x195   : > { %v766_v13 = vpop.permute.xlu1 %765 }
 0x198   : > { %v786_v12 = vpop.permute.xlu0 %785 }
 0x21a   : > { %v632_v57 = vpop.f32.mrb[0].mxu0 }
 0x21b   : > { %v633_v58 = vadd.f32 %v632_v57, %v553_v56  ;;  %v634_v59 = vpop.f32.mrb[1].mxu0 }
 0x21c   : > { %v635_v60 = vadd.f32 %v634_v59, %v553_v56 }
 0x21d   : > { %v637_v61 = vmax.f32 %v633_v58, 0.0 }
 0x21e   : > { %v638_v62 = vmax.f32 %v635_v60, 0.0 }
 0x21f   : > { %v1091_v8 = vcombine.low %v637_v61, %v637_v61 }
 0x220   : > { %v641_v63 = vcombine.low %v637_v61, %v638_v62  ;;  %v1090_v0 = vcombine.low %v638_v62, %v638_v62 }
 0x222   : > { %643 = vst [vmem:[#allocation2 + $0x4] sm:$0xff] %v641_v63  ;;  %729 = vst [vmem:[#allocation3 + $0x20] sm:$0xf] %v641_v63 }
 0x223   : > { %730 = vst [vmem:[#allocation3 + $0x28] sm:$0xf] %v1090_v0 }
 0x229   : > { %v701_v1 = vld [vmem:[#allocation2 + $0x8] sm:$0xf]  ;;  %v700_v2 = vld [vmem:[#allocation2] sm:$0xff] }
 0x22a   : > { %709 = vrot.lane.b32.xlu0 %v701_v1, %s1162_s18  ;;  %705 = vrot.lane.b32.xlu1 %v700_v2, %s1162_s18  ;;  %v645_v3 = vld [vmem:[#allocation2 + $0x8] sm:$0xf]  ;;  %v704_v5 = vcombine.high %v700_v2, %v700_v2  ;;  %v667_v7 = vcombine.low %v700_v2, %v700_v2 }
 0x22b   : > { %v682_v4 = vld [vmem:[#allocation2 + $0x8] sm:$0xf] }
 0x22c   : > { %v1088_v6 = vld [vmem:[#allocation2 + $0x8] ss:$0 sps:$4 sm:$0xff]  }
 0x22e   : > { %653 = vrot.lane.b32.xlu1 %v645_v3, %s1163_s19  ;;  %649 = vrot.lane.b32.xlu0 %v700_v2, %s1163_s19 }
 0x232   : > { %690 = vrot.lane.b32.xlu1 %v682_v4, %s1164_s20  ;;  %761 = vrot.lane.b32.xlu0 %v641_v63, %s1159_s22 }
 0x236   : > { %671 = vrot.lane.b32.xlu1 %v700_v2, %s1165_s24  ;;  %651 = vrot.lane.b32.xlu0 %v704_v5, %s1163_s19 }
 0x23a   : > { %686 = vrot.lane.b32.xlu1 %v700_v2, %s1164_s20  ;;  %688 = vrot.lane.b32.xlu0 %v704_v5, %s1164_s20  ;;  %s1012_s20 = sshll.u32 %s1234_s9, 7  ;;  %s1167_s9 = smov [#allocation4]  }
 0x23b   : > { %s1447_s12 = scalar_lea.hbm %s1497_s8, %s1012_s20  ;;  %s1096_s19 = sshll.u32 %s1167_s9, 4  ;;  %s1097_s19 = int_to_ptr.vmem [resolvable:$false] %s1096_s19 }
 0x23e   : > { %736 = vrot.lane.b32.xlu1 %v641_v63, %s1158_s21  ;;  %673 = vrot.lane.b32.xlu0 %v1088_v6, %s1165_s24 }
 0x242   : > { %783 = vrot.lane.b32.xlu1 %v641_v63, %s1160_s23  ;;  %669 = vrot.lane.b32.xlu0 %v667_v7, %s1165_s24 }
 0x246   : > { %707 = vrot.lane.b32.xlu1 %v704_v5, %s1162_s18  ;;  %763 = vrot.lane.b32.xlu0 %v1090_v0, %s1159_s22 }
 0x24a   : > { %738 = vrot.lane.b32.xlu1 %v1090_v0, %s1158_s21  ;;  %800 = vrot.lane.b32.xlu0 %v1090_v0, %s1166_s25  ;;  %s1098_s21 = scalar_lea.vmem %s1097_s19, 256 }
 0x24e   : > { %781 = vrot.lane.b32.xlu1 %v1091_v8, %s1160_s23  ;;  %798 = vrot.lane.b32.xlu0 %v641_v63, %s1166_s25  ;;  %s296_s23 = sand.u32 1, %s1146_s28  }
 0x24f   : > { %s997_s18 = sshll.u32 %s296_s23, 3  ;;  %s920_s13 = scalar_lea.sflag [#allocation5], %s296_s23 }
 0x250   : > { %s298_s24 = scalar_lea.vmem [#allocation4], %s997_s18 }
 0x252   : > { %802 = vrot.lane.b32.xlu1 %v794_v9, %s1166_s25  ;;  %s934_s25 = sshll.u32 %s298_s24, 4  ;;  %s1449_s25 = int_to_ptr.vmem [resolvable:$true] %s934_s25 }
 0x253   : > { %s1092_s17 = scalar_lea.vmem %s1449_s25, 128  ;;  %p1099_p0 = scmp.lt.s32.totalorder %s1449_s25, %s1097_s19 }
 0x254   : > { %p1093_p11 = scmp.ne.s32.totalorder %s1449_s25, %s1092_s17  ;;  %p1100_p1 = scmp.lt.s32.totalorder %s1098_s21, %s1092_s17 }
 0x256   : > { %826 = vperm.xlu1 %1080, %v823_v10   ;;  %p1094_p12 = pnand %p1093_p11, %p1251_p5  ;;  %p1101_p2 = por %p1100_p1, %p1099_p0 }
 0x258   : > { %p1095_p13 = pneg %p1094_p12 }
 0x25a   : > { %p1102_p3 = pnand %p1101_p2, %p1095_p13 }
 0x29c   : > { %v710_v14 = vpop.permute.xlu0 %709  ;;  %v706_v16 = vpop.permute.xlu1 %705 }
 0x2a0   : > { %v650_v17 = vpop.permute.xlu0 %649  ;;  %v654_v18 = vpop.permute.xlu1 %653 }
 0x2a4   : > { %v762_v19 = vpop.permute.xlu0 %761  ;;  %v691_v20 = vpop.permute.xlu1 %690 }
 0x2a8   : > { %v652_v21 = vpop.permute.xlu0 %651  ;;  %v672_v22 = vpop.permute.xlu1 %671 }
 0x2a9   : > { %v655_v23 = vsel %vm361_vm5, %v650_v17, %v652_v21  ;;  %v656_v24 = vsel %vm361_vm5, %v652_v21, %v654_v18 }
 0x2aa   : > { %v659_v25 = vsel %vm350_vm3, %v655_v23, 0.0  ;;  %v660_v28 = vsel %vm351_vm4, %v656_v24, 0.0 }
 0x2ab   : > { %661 = vst [vmem:[#allocation3] sm:$0xf] %v659_v25  ;;  %662 = vst [vmem:[#allocation3 + $0x8] sm:$0xf] %v660_v28 }
 0x2ac   : > { %v689_v29 = vpop.permute.xlu0 %688  ;;  %v687_v30 = vpop.permute.xlu1 %686 }
 0x2ad   : > { %v693_v31 = vsel %vm412_vm6, %v689_v29, %v691_v20  ;;  %v692_v34 = vsel %vm412_vm6, %v687_v30, %v689_v29 }
 0x2ae   : > { %v697_v35 = vsel %vm402_vm8, %v693_v31, 0.0  ;;  %v696_v36 = vsel %vm401_vm7, %v692_v34, 0.0 }
 0x2af   : > { %699 = vst [vmem:[#allocation3 + $0x18] sm:$0xf] %v697_v35  ;;  %698 = vst [vmem:[#allocation3 + $0x10] sm:$0xf] %v696_v36 }
 0x2b0   : > { %v674_v37 = vpop.permute.xlu0 %673  ;;  %v737_v38 = vpop.permute.xlu1 %736 }
 0x2b1   : > { %v676_v39 = vsel %vm382_vm10, %v672_v22, %v674_v37 }
 0x2b2   : > { %680 = vst [vmem:[#allocation3 + $0x8] sm:$0xf0] %v676_v39 }
 0x2b4   : > { %v670_v40 = vpop.permute.xlu0 %669  ;;  %v784_v41 = vpop.permute.xlu1 %783 }
 0x2b5   : > { %v675_v42 = vsel %vm382_vm10, %v670_v40, %v672_v22  ;;  %v788_v43 = vsel %vm511_vm9, %v784_v41, %v786_v12  ;;  %v910_v22 = vcombine.high %v1275_v15, %v1275_v15 }
 0x2b6   : > { %679 = vst [vmem:[#allocation3] sm:$0xf0] %v675_v42  ;;  %792 = vst [vmem:[#allocation3 + $0x38] sm:$0xf0] %v788_v43 }
 0x2b8   : > { %v764_v44 = vpop.permute.xlu0 %763  ;;  %v708_v45 = vpop.permute.xlu1 %707 }
 0x2b9   : > { %v767_v46 = vsel %vm490_vm12, %v762_v19, %v764_v44  ;;  %v768_v47 = vsel %vm490_vm12, %v764_v44, %v766_v13  ;;  %v711_v48 = vsel %vm432_vm2, %v706_v16, %v708_v45  ;;  %v712_v49 = vsel %vm432_vm2, %v708_v45, %v710_v14  ;;  %v814_v3 = vld [vmem:[#allocation3 + $0x8] sm:$0xff]  ;;  %v812_v19 = vld [vmem:[%s1495_s6] sm:$0xf] }
 0x2ba   : > { %v771_v50 = vsel %vm350_vm3, %v767_v46, 0.0  ;;  %v772_v51 = vsel %vm351_vm4, %v768_v47, 0.0  ;;  %v715_v52 = vsel %vm350_vm3, %v711_v48, 0.0  ;;  %v716_v53 = vsel %vm351_vm4, %v712_v49, 0.0 }
 0x2bb   : > { %773 = vst [vmem:[#allocation3 + $0x30] sm:$0xf] %v771_v50  ;;  %774 = vst [vmem:[#allocation3 + $0x38] sm:$0xf] %v772_v51  ;;  %v719_v54 = vrot.slane %v715_v52, 4  ;;  %v720_v55 = vrot.slane %v716_v53, 4 }
 0x2bc   : > { %v801_v56 = vpop.permute.xlu0 %800  ;;  %v739_v57 = vpop.permute.xlu1 %738 }
 0x2bd   : > { %723 = vst [vmem:[#allocation3 + $0x10] sm:$0xf0] %v719_v54  ;;  %724 = vst [vmem:[#allocation3 + $0x18] sm:$0xf0] %v720_v55  ;;  %v742_v58 = vsel %vm464_vm11, %v737_v38, %v739_v57  ;;  %v743_v59 = vsel %vm464_vm11, %v739_v57, %v741_v11  ;;  %v813_v6 = vld [vmem:[#allocation3] sm:$0xff] }
 0x2be   : > { %v746_v60 = vsel %vm401_vm7, %v742_v58, 0.0  ;;  %v747_v26 = vsel %vm402_vm8, %v743_v59, 0.0 }
 0x2bf   : > { %v750_v27 = vrot.slane %v746_v60, 4  ;;  %v751_v61 = vrot.slane %v747_v26, 4 }
 0x2c0   : > { %v799_v62 = vpop.permute.xlu0 %798  ;;  %v782_v63 = vpop.permute.xlu1 %781 }
 0x2c1   : > { %754 = vst [vmem:[#allocation3 + $0x20] sm:$0xf0] %v750_v27  ;;  %755 = vst [vmem:[#allocation3 + $0x28] sm:$0xf0] %v751_v61  ;;  %v804_v0 = vsel %vm529_vm13, %v799_v62, %v801_v56  ;;  %v787_v1 = vsel %vm511_vm9, %v782_v63, %v784_v41 }
 0x2c2   : > { %v808_v2 = vsel %vm401_vm7, %v804_v0, 0.0  ;;  %791 = vst [vmem:[#allocation3 + $0x30] sm:$0xf0] %v787_v1  ;;  %v820_v12 = vld [vmem:[#allocation3 + $0x38] sm:$0xff] }
 0x2c3   : > { %810 = vst [vmem:[#allocation3 + $0x40] sm:$0xf] %v808_v2 }
 0x2c4   : > { %v803_v4 = vpop.permute.xlu1 %802  ;;  %v816_v5 = vld [vmem:[#allocation3 + $0x18] sm:$0xff]  ;;  %v815_v7 = vld [vmem:[#allocation3 + $0x10] sm:$0xff] }
 0x2c5   : > { %v805_v8 = vsel %vm529_vm13, %v801_v56, %v803_v4  ;;  %v1021_v9 = vpack.c.bf16 %v816_v5, %v814_v3  ;;  %v1023_v10 = vpack.c.bf16 %v815_v7, %v813_v6 }
 0x2c6   : > { %v809_v11 = vsel %vm402_vm8, %v805_v8, 0.0 }
 0x2c7   : > { %811 = vst [vmem:[#allocation3 + $0x48] sm:$0xf] %v809_v11  ;;  %1022 = vmatprep.subr.bf16.mxu1 %v1021_v9 }
 0x2c8   : > { %1024 = vmatpush1.bf16.msra.mxu1 %v1023_v10  ;;  %v818_v32 = vld [vmem:[#allocation3 + $0x28] sm:$0xff]  ;;  %v817_v13 = vld [vmem:[#allocation3 + $0x20] sm:$0xff] }
 0x2c9   : > { %v1025_v14 = vpack.c.bf16 %v820_v12, %v818_v32  ;;  %v819_v16 = vld [vmem:[#allocation3 + $0x30] sm:$0xff] }
 0x2ca   : > { %v1027_v17 = vpack.c.bf16 %v819_v16, %v817_v13  ;;  %v821_v33 = vld [vmem:[#allocation3 + $0x40] sm:$0xf] }
 0x2cb   : > { %1026 = vmatprep.subr.bf16.mxu1 %v1025_v14 }
 0x2cc   : > { %1028 = vmatpush1.bf16.msra.mxu1 %v1027_v17 }
 0x2ce   : > { %v822_v18 = vld [vmem:[#allocation3 + $0x48] sm:$0xf] }
 0x2cf   : > { %1003 = vmatprep.subr.msk.mxu1 %vm559_vm14, %v822_v18 }
 0x2d0   : > { %1004 = vmatpush1.msk.msra.mxu1 %vm559_vm14, %v821_v33 }
 0x2d1   : > { %1005 = vmatmul.mubr.msk.f32.vlgmr.msra.gmra.mrb[0].mxu1 %vm555_vm15, %v812_v19 }
 0x2d5   : > { %v827_v20 = vpop.permute.xlu1 %826 }
 0x3a4   : > { %v904_v21 = vpop.f32.mrb[0].mxu1 }
 0x3a5   : > { %v905_v23 = vadd.f32 %v904_v21, %v827_v20  ;;  %v906_v24 = vpop.f32.mrb[1].mxu1 }
 0x3a6   : > { %v907_v25 = vadd.f32 %v906_v24, %v827_v20 }
 0x3a7   : > { %v912_v28 = vadd.f32 %v905_v23, %v1275_v15 }
 0x3a8   : > { %v913_v29 = vadd.f32 %v910_v22, %v907_v25 }
 0x3aa   : > { %v916_v30 = vcombine.low %v912_v28, %v913_v29 }
 0x3ac   : > { %918 = vst [vmem:[%s298_s24] sm:$0xff] %v916_v30 }
 0x3ad   : > { %1105 = shalt.err (!%p1102_p3)
}
 0x3ae   : > { %s1106_s22 = scalar_lea.hbm %s1447_s12, 128  ;;  %s1110_s20 = scalar_lea.hbm %s1497_s8, 256 }
 0x3af   : > { %p1107_p4 = scmp.ne.s32.totalorder %s1447_s12, %s1106_s22  ;;  %p1111_p9 = scmp.lt.u32.totalorder %s1447_s12, %s1497_s8 }
 0x3b0   : > { %p1112_p10 = scmp.lt.u32.totalorder %s1110_s20, %s1106_s22  ;;  %p1114_p12 = scmp.lt.u32.totalorder %s1106_s22, %s1447_s12 }
 0x3b1   : > { %p1108_p7 = pnand %p1107_p4, %p1251_p5 }
 0x3b2   : > { %p1113_p11 = por %p1112_p10, %p1111_p9 }
 0x3b3   : > { %p1109_p8 = pneg %p1108_p7 }
 0x3b4   : > { %p1115_p13 = por %p1114_p12, %p1113_p11 }
 0x3b6   : > { %p1116_p0 = pnand %p1115_p13, %p1109_p8 }
 0x3b8   : > { %1119 = shalt.err (!%p1116_p0)
}
 0x3b9   : > { %1029 = dma.vmem_to_hbm [thread:$0]  (%p1251_p5), %s1449_s25, 128, %s1447_s12, %s920_s13  }
 0x3ba PF: > { %p1035_p1 = scmp.ge.s32.totalorder %s1154_s30, 2  ;;  %s946_s10 = sand.u32 1, %s1142_s27  }
 0x3bb   : > { %s947_s17 = scalar_lea.sflag [#allocation5], %s946_s10 }
 0x3bc   : > { %p1032_p2 = pnand %p1035_p1, %p1255_p6 }
 0x3be   : > { %1137 = dma.done.wait (!%p1032_p2), %s947_s17, 128  }
 0x3bf   : > { %1139 = vsyncadd (!%p1032_p2), %s947_s17, 4294967168  ;;  %p18_p3 = scmp.ge.s32.totalorder %s1238_s11, 4   ;;  %s1500_s27 = smov %s1146_s28 }
 0x3c0   : > { %s1501_s28 = smov %s1150_s29  ;;  %s1502_s29 = smov %s1249_s14 }
 0x3c1   : > { %s1503_s30 = smov %s1238_s11  ;;  %20 = sbr.rel (!%p18_p3) target bundleno = 3 (0x3), region = 87 }
 0x3c8   :  { %952 = vsyncpa [#allocation5], 1 }
 0x3c9   :  { %954 = vsyncpa [#allocation5 + $0x1], 1 }

</bundles_post_ra>
